<compile_context>
chip_gen: v5e
topology: v5e:2x2
jax: 0.10.0
libtpu: 0.0.40
codegen_flags: <defaults>
</compile_context>

<pallas_src>
import functools

import jax
import jax.numpy as jnp
from jax.experimental import pallas as pl
from jax.experimental.pallas import tpu as pltpu


LN_EPS = 1e-5
_TB_MAX = 512  # batch tile rows for large batches


def _round_up(x, m):
    return ((x + m - 1) // m) * m


def _category_kernel(x_ref, w1_ref, lnp_ref, segr_ref, segb_ref, w2_ref, b2_ref, o_ref,
                     *, inv_hid):
    """One batch tile, ALL heads: Linear -> segmented LayerNorm -> ReLU -> Linear."""
    x = x_ref[...]                                                        # (tb, D) bf16
    # Layer 1 for all heads at once: (tb, D) @ (D, H*HID), f32 accumulation.
    h = jnp.dot(x, w1_ref[...], preferred_element_type=jnp.float32)      # (tb, HIDALL) f32

    lnp = lnp_ref[...]                                                    # (3, HIDALL) f32
    h = h + lnp[0:1, :]                                                   # + b1

    # Segmented LayerNorm: per-head mean/var via 0/1 segment matmuls (lane-dense, no reshape).
    segr = segr_ref[...]                                                  # (HIDALL, H8) 0/1 f32
    segb = segb_ref[...]                                                  # (H8, HIDALL) 0/1 f32
    sums = jnp.dot(h, segr, preferred_element_type=jnp.float32)           # (tb, H8) per-head sums
    mean = jnp.dot(sums, segb, preferred_element_type=jnp.float32) * inv_hid   # broadcast back
    c = h - mean
    sq = jnp.dot(c * c, segr, preferred_element_type=jnp.float32)         # per-head sum of squares
    var = jnp.dot(sq, segb, preferred_element_type=jnp.float32) * inv_hid
    hn = c * jax.lax.rsqrt(var + LN_EPS)                                  # EUP rsqrt
    hn = hn * lnp[1:2, :] + lnp[2:3, :]                                   # * gamma + beta

    # ReLU (Dropout is identity in eval mode).
    hn = jnp.maximum(hn, 0.0)

    # Layer 2 for all heads at once: block-diagonal W2, packed lane-dense output slab.
    o_ref[...] = (jnp.dot(hn.astype(jnp.bfloat16), w2_ref[...],
                          preferred_element_type=jnp.float32) + b2_ref[...])


def _run_category(x_bf16, w1, lnp, segr, segb, w2, b2, *, hid):
    """x_bf16: (B, D) bf16.  w1: (D, HIDALL) bf16; lnp: (3, HIDALL) f32 (b1/gamma/beta);
    segr: (HIDALL, H8) f32; segb: (H8, HIDALL) f32; w2: (HIDALL, OUT_PAD) bf16;
    b2: (1, OUT_PAD) f32.  Returns (B, OUT_PAD) f32 packed head outputs."""
    B, D = x_bf16.shape
    HIDALL = w1.shape[1]
    H8 = segr.shape[1]
    OUT_PAD = w2.shape[1]

    # Batch tiling: fixed tiles for big batches, a single padded-to-8 tile otherwise.
    tb = _TB_MAX if B > _TB_MAX else _round_up(B, 8)
    Bp = _round_up(B, tb)
    if Bp != B:
        x_bf16 = jnp.pad(x_bf16, ((0, Bp - B), (0, 0)))
    grid = (Bp // tb,)

    flops = 2 * Bp * (D * HIDALL + HIDALL * OUT_PAD + 4 * HIDALL * H8)
    bytes_accessed = int(Bp * D * 2 + w1.size * 2 + w2.size * 2
                         + (lnp.size + segr.size + segb.size + b2.size) * 4
                         + Bp * OUT_PAD * 4)

    out = pl.pallas_call(
        functools.partial(_category_kernel, inv_hid=1.0 / float(hid)),
        out_shape=jax.ShapeDtypeStruct((Bp, OUT_PAD), jnp.float32),
        grid=grid,
        in_specs=[
            pl.BlockSpec((tb, D), lambda b: (b, 0)),            # x batch tile (bf16)
            pl.BlockSpec((D, HIDALL), lambda b: (0, 0)),         # W1 (all heads, bf16)
            pl.BlockSpec((3, HIDALL), lambda b: (0, 0)),         # b1 / gamma / beta
            pl.BlockSpec((HIDALL, H8), lambda b: (0, 0)),        # segment reduce matrix
            pl.BlockSpec((H8, HIDALL), lambda b: (0, 0)),        # segment broadcast matrix
            pl.BlockSpec((HIDALL, OUT_PAD), lambda b: (0, 0)),   # block-diagonal W2 (bf16)
            pl.BlockSpec((1, OUT_PAD), lambda b: (0, 0)),        # packed b2
        ],
        out_specs=pl.BlockSpec((tb, OUT_PAD), lambda b: (b, 0)),
        compiler_params=pltpu.CompilerParams(
            dimension_semantics=("parallel",),
            vmem_limit_bytes=48 * 1024 * 1024),
        cost_estimate=pl.CostEstimate(
            flops=flops, transcendentals=Bp * HIDALL, bytes_accessed=bytes_accessed),
    )(x_bf16, w1, lnp, segr, segb, w2, b2)

    return out[:B] if Bp != B else out


class CategoryAwareAttributePredictorPallas:
    """JAX/Pallas port of the PyTorch CategoryAwareAttributePredictor (eval/inference mode)."""

    def __init__(self, clip_dim, category_attributes, attribute_dims,
                 hidden_dim=512, dropout_rate=0.2, num_hidden_layers=1, seed=0):
        assert num_hidden_layers == 1, "only the default (1 hidden layer) path implemented"
        # TODO(synk): num_hidden_layers > 1 would repeat (Linear+ReLU+Dropout) blocks in-kernel.
        del dropout_rate  # Dropout is identity in eval mode.
        self.category_attributes = category_attributes
        self.hidden_dim = hidden_dim
        self.params = {}   # per-head params (for reference / inspection)
        self.packed = {}   # per-category packed params fed to the fused kernel

        key = jax.random.PRNGKey(seed)
        for category, attributes in category_attributes.items():
            keys, adims = [], []
            w1s, b1s, gs, betas, w2s, b2s = [], [], [], [], [], []
            for attr_name in attributes.keys():
                k = f"{category}_{attr_name}"
                if k not in attribute_dims:
                    continue
                a_dim = attribute_dims[k]
                key, k1, k2, k3, k4 = jax.random.split(key, 5)
                # PyTorch-style uniform(+-1/sqrt(fan_in)) init, deterministic.
                lim1 = 1.0 / (clip_dim ** 0.5)
                lim2 = 1.0 / (hidden_dim ** 0.5)
                w1 = jax.random.uniform(k1, (clip_dim, hidden_dim), jnp.float32, -lim1, lim1)
                b1 = jax.random.uniform(k2, (hidden_dim,), jnp.float32, -lim1, lim1)
                gamma = jnp.ones((hidden_dim,), jnp.float32)
                beta = jnp.zeros((hidden_dim,), jnp.float32)
                w2 = jax.random.uniform(k3, (hidden_dim, a_dim), jnp.float32, -lim2, lim2)
                b2 = jax.random.uniform(k4, (a_dim,), jnp.float32, -lim2, lim2)

                w1_bf = w1.astype(jnp.bfloat16)   # bf16 MXU weights, f32 accumulation
                w2_bf = w2.astype(jnp.bfloat16)
                self.params[k] = dict(w1=w1_bf, b1=b1, gamma=gamma, beta=beta,
                                      w2=w2_bf, b2=b2, attr_dim=a_dim)
                keys.append(k); adims.append(a_dim)
                w1s.append(w1_bf); b1s.append(b1); gs.append(gamma); betas.append(beta)
                w2s.append(w2_bf); b2s.append(b2)

            if not keys:
                continue

            H = len(keys)
            HID = hidden_dim
            HIDALL = H * HID
            H8 = _round_up(H, 8)
            offsets, total = [], 0
            for a in adims:
                offsets.append(total); total += a
            OUT_PAD = _round_up(max(total, 1), 128)

            # Concatenated layer-1 weights and merged LN params.
            w1cat = jnp.concatenate(w1s, axis=1)                               # (D, HIDALL) bf16
            lnp = jnp.stack([jnp.concatenate(b1s), jnp.concatenate(gs),
                             jnp.concatenate(betas)], axis=0)                  # (3, HIDALL) f32

            # Block-diagonal layer-2 weights with packed output columns, and segment matrices.
            w2blk = jnp.zeros((HIDALL, OUT_PAD), jnp.float32)
            b2pack = jnp.zeros((OUT_PAD,), jnp.float32)
            segr = jnp.zeros((HIDALL, H8), jnp.float32)
            for g, (a, off) in enumerate(zip(adims, offsets)):
                w2blk = w2blk.at[g * HID:(g + 1) * HID, off:off + a].set(
                    w2s[g].astype(jnp.float32))
                b2pack = b2pack.at[off:off + a].set(b2s[g])
                segr = segr.at[g * HID:(g + 1) * HID, g].set(1.0)

            self.packed[category] = dict(
                keys=keys, attr_dims=adims, offsets=offsets, hid=HID,
                w1=w1cat, lnp=lnp, segr=segr, segb=segr.T,
                w2=w2blk.astype(jnp.bfloat16), b2=b2pack.reshape(1, OUT_PAD))

    def __call__(self, clip_features, category):
        pk = self.packed.get(category)
        if pk is None:
            return {}
        # `.float()` per PyTorch, then bf16 once for the MXU datapath (documented deviation).
        x = clip_features.astype(jnp.float32).astype(jnp.bfloat16)
        out = _run_category(x, pk["w1"], pk["lnp"], pk["segr"], pk["segb"],
                            pk["w2"], pk["b2"], hid=pk["hid"])   # (B, OUT_PAD) packed slab
        results = {}
        for k, a, off in zip(pk["keys"], pk["attr_dims"], pk["offsets"]):
            results[k] = out[:, off:off + a]
        return results


def _reference_head(x, p):
    """Pure-JAX per-head reference: bf16 matmul inputs / f32 accumulation, exact-f32 LayerNorm."""
    xb = x.astype(jnp.float32).astype(jnp.bfloat16)
    h = jnp.dot(xb, p["w1"], preferred_element_type=jnp.float32) + p["b1"]
    mean = h.mean(-1, keepdims=True)
    var = ((h - mean) ** 2).mean(-1, keepdims=True)
    h = (h - mean) * jax.lax.rsqrt(var + LN_EPS) * p["gamma"] + p["beta"]
    h = jnp.maximum(h, 0.0)
    return jnp.dot(h.astype(jnp.bfloat16), p["w2"], preferred_element_type=jnp.float32) + p["b2"]


if __name__ == "__main__":
    # Small, deterministic example.
    B, CLIP_DIM, HIDDEN = 8, 128, 64
    category_attributes = {
        "upper_body": {"sleeve_length": None, "neckline": None, "fabric": None},
        "lower_body": {"pant_length": None},
    }
    attribute_dims = {
        "upper_body_sleeve_length": 5,
        "upper_body_neckline": 7,
        "upper_body_fabric": 9,
        "lower_body_pant_length": 4,
    }

    model = CategoryAwareAttributePredictorPallas(
        clip_dim=CLIP_DIM,
        category_attributes=category_attributes,
        attribute_dims=attribute_dims,
        hidden_dim=HIDDEN,
        seed=0,
    )

    clip_features = jax.random.normal(jax.random.PRNGKey(0), (B, CLIP_DIM), jnp.float32)

    # Multi-head category: one fused pallas_call for all 3 heads.
    outputs = model(clip_features, "upper_body")
    jax.block_until_ready(outputs)
    for k, out in outputs.items():
        ref = _reference_head(clip_features, model.params[k])
        assert out.shape == (B, attribute_dims[k]), (k, out.shape)
        # Tolerance covers bf16 main matmuls + in-kernel segment-matmul LN statistics.
        assert jnp.allclose(out, ref, atol=2e-2, rtol=2e-2), (
            k, float(jnp.max(jnp.abs(out - ref))))

    # Single-head category.
    outputs2 = model(clip_features, "lower_body")
    jax.block_until_ready(outputs2)
    for k, out in outputs2.items():
        ref = _reference_head(clip_features, model.params[k])
        assert out.shape == (B, attribute_dims[k]), (k, out.shape)
        assert jnp.allclose(out, ref, atol=2e-2, rtol=2e-2), k

    print("KERNEL_OK")
</pallas_src>

<mosaic_0001>
module attributes {stable_mosaic.version = 11 : i64} {
  func.func @_category_kernel(%arg0: i32, %arg1: memref<8x128xbf16, #tpu.memory_space<vmem>>, %arg2: memref<128x192xbf16, #tpu.memory_space<vmem>>, %arg3: memref<3x192xf32, #tpu.memory_space<vmem>>, %arg4: memref<192x8xf32, #tpu.memory_space<vmem>>, %arg5: memref<8x192xf32, #tpu.memory_space<vmem>>, %arg6: memref<192x128xbf16, #tpu.memory_space<vmem>>, %arg7: memref<1x128xf32, #tpu.memory_space<vmem>>, %arg8: memref<8x128xf32, #tpu.memory_space<vmem>>) attributes {dimension_semantics = [#tpu.dimension_semantics<parallel>], iteration_bounds = array<i64: 1>, scalar_prefetch = 0 : i64, scratch_operands = 0 : i64, tpu.core_type = #tpu.core_type<tc>, window_params = [{transform_indices = @transform_0, window_bounds = array<i64: 8, 128>}, {pipeline_mode = #tpu.pipeline_mode<synchronous>, transform_indices = @transform_1, window_bounds = array<i64: 128, 192>}, {pipeline_mode = #tpu.pipeline_mode<synchronous>, transform_indices = @transform_2, window_bounds = array<i64: 3, 192>}, {pipeline_mode = #tpu.pipeline_mode<synchronous>, transform_indices = @transform_3, window_bounds = array<i64: 192, 8>}, {pipeline_mode = #tpu.pipeline_mode<synchronous>, transform_indices = @transform_4, window_bounds = array<i64: 8, 192>}, {pipeline_mode = #tpu.pipeline_mode<synchronous>, transform_indices = @transform_5, window_bounds = array<i64: 192, 128>}, {pipeline_mode = #tpu.pipeline_mode<synchronous>, transform_indices = @transform_6, window_bounds = array<i64: 1, 128>}, {transform_indices = @transform_7, window_bounds = array<i64: 8, 128>}]} {
    %c0 = arith.constant 0 : index
    %c0_0 = arith.constant 0 : index
    %0 = vector.load %arg1[%c0, %c0_0] : memref<8x128xbf16, #tpu.memory_space<vmem>>, vector<8x128xbf16>
    %c0_1 = arith.constant 0 : index
    %c0_2 = arith.constant 0 : index
    %1 = vector.load %arg2[%c0_1, %c0_2] : memref<128x192xbf16, #tpu.memory_space<vmem>>, vector<128x192xbf16>
    %cst = arith.constant dense<0.000000e+00> : vector<8x192xf32>
    %2 = tpu.matmul %0, %1, %cst {dimension_numbers = #tpu.dot_dimension_numbers<[1], [0], [0], [1], [0, 0, 1, 1], [], []>} : vector<8x128xbf16>, vector<128x192xbf16>, vector<8x192xf32> -> vector<8x192xf32>
    %c0_3 = arith.constant 0 : index
    %c0_4 = arith.constant 0 : index
    %3 = vector.load %arg3[%c0_3, %c0_4] : memref<3x192xf32, #tpu.memory_space<vmem>>, vector<3x192xf32>
    %4 = vector.extract_strided_slice %3 {offsets = [0, 0], sizes = [1, 192], strides = [1, 1]} : vector<3x192xf32> to vector<1x192xf32>
    %5 = vector.broadcast %4 : vector<1x192xf32> to vector<8x192xf32>
    %6 = arith.addf %2, %5 : vector<8x192xf32>
    %c0_5 = arith.constant 0 : index
    %c0_6 = arith.constant 0 : index
    %7 = vector.load %arg4[%c0_5, %c0_6] : memref<192x8xf32, #tpu.memory_space<vmem>>, vector<192x8xf32>
    %c0_7 = arith.constant 0 : index
    %c0_8 = arith.constant 0 : index
    %8 = vector.load %arg5[%c0_7, %c0_8] : memref<8x192xf32, #tpu.memory_space<vmem>>, vector<8x192xf32>
    %cst_9 = arith.constant dense<0.000000e+00> : vector<8x8xf32>
    %9 = tpu.matmul %6, %7, %cst_9 {dimension_numbers = #tpu.dot_dimension_numbers<[1], [0], [0], [1], [0, 0, 1, 1], [], []>} : vector<8x192xf32>, vector<192x8xf32>, vector<8x8xf32> -> vector<8x8xf32>
    %cst_10 = arith.constant dense<0.000000e+00> : vector<8x192xf32>
    %10 = tpu.matmul %9, %8, %cst_10 {dimension_numbers = #tpu.dot_dimension_numbers<[1], [0], [0], [1], [0, 0, 1, 1], [], []>} : vector<8x8xf32>, vector<8x192xf32>, vector<8x192xf32> -> vector<8x192xf32>
    %cst_11 = arith.constant 1.562500e-02 : f32
    %11 = vector.broadcast %cst_11 : f32 to vector<8x192xf32>
    %12 = arith.mulf %10, %11 : vector<8x192xf32>
    %13 = arith.subf %6, %12 : vector<8x192xf32>
    %14 = arith.mulf %13, %13 : vector<8x192xf32>
    %cst_12 = arith.constant dense<0.000000e+00> : vector<8x8xf32>
    %15 = tpu.matmul %14, %7, %cst_12 {dimension_numbers = #tpu.dot_dimension_numbers<[1], [0], [0], [1], [0, 0, 1, 1], [], []>} : vector<8x192xf32>, vector<192x8xf32>, vector<8x8xf32> -> vector<8x8xf32>
    %cst_13 = arith.constant dense<0.000000e+00> : vector<8x192xf32>
    %16 = tpu.matmul %15, %8, %cst_13 {dimension_numbers = #tpu.dot_dimension_numbers<[1], [0], [0], [1], [0, 0, 1, 1], [], []>} : vector<8x8xf32>, vector<8x192xf32>, vector<8x192xf32> -> vector<8x192xf32>
    %cst_14 = arith.constant 1.562500e-02 : f32
    %17 = vector.broadcast %cst_14 : f32 to vector<8x192xf32>
    %18 = arith.mulf %16, %17 : vector<8x192xf32>
    %cst_15 = arith.constant 9.99999974E-6 : f32
    %19 = vector.broadcast %cst_15 : f32 to vector<8x192xf32>
    %20 = arith.addf %18, %19 : vector<8x192xf32>
    %21 = math.rsqrt %20 : vector<8x192xf32>
    %22 = arith.mulf %13, %21 : vector<8x192xf32>
    %23 = vector.extract_strided_slice %3 {offsets = [1, 0], sizes = [1, 192], strides = [1, 1]} : vector<3x192xf32> to vector<1x192xf32>
    %24 = vector.broadcast %23 : vector<1x192xf32> to vector<8x192xf32>
    %25 = arith.mulf %22, %24 : vector<8x192xf32>
    %26 = vector.extract_strided_slice %3 {offsets = [2, 0], sizes = [1, 192], strides = [1, 1]} : vector<3x192xf32> to vector<1x192xf32>
    %27 = vector.broadcast %26 : vector<1x192xf32> to vector<8x192xf32>
    %28 = arith.addf %25, %27 : vector<8x192xf32>
    %cst_16 = arith.constant 0.000000e+00 : f32
    %29 = vector.broadcast %cst_16 : f32 to vector<8x192xf32>
    %30 = arith.maximumf %28, %29 : vector<8x192xf32>
    %31 = arith.truncf %30 : vector<8x192xf32> to vector<8x192xbf16>
    %c0_17 = arith.constant 0 : index
    %c0_18 = arith.constant 0 : index
    %32 = vector.load %arg6[%c0_17, %c0_18] : memref<192x128xbf16, #tpu.memory_space<vmem>>, vector<192x128xbf16>
    %cst_19 = arith.constant dense<0.000000e+00> : vector<8x128xf32>
    %33 = tpu.matmul %31, %32, %cst_19 {dimension_numbers = #tpu.dot_dimension_numbers<[1], [0], [0], [1], [0, 0, 1, 1], [], []>} : vector<8x192xbf16>, vector<192x128xbf16>, vector<8x128xf32> -> vector<8x128xf32>
    %c0_20 = arith.constant 0 : index
    %c0_21 = arith.constant 0 : index
    %34 = vector.load %arg7[%c0_20, %c0_21] : memref<1x128xf32, #tpu.memory_space<vmem>>, vector<1x128xf32>
    %35 = vector.broadcast %34 : vector<1x128xf32> to vector<8x128xf32>
    %36 = arith.addf %33, %35 : vector<8x128xf32>
    %c0_22 = arith.constant 0 : index
    %c0_23 = arith.constant 0 : index
    %37 = vector.load %arg8[%c0_22, %c0_23] : memref<8x128xf32, #tpu.memory_space<vmem>>, vector<8x128xf32>
    tpu.vector_store %arg8[%c0_22, %c0_23], %36 {strides = array<i32>} : memref<8x128xf32, #tpu.memory_space<vmem>>, vector<8x128xf32>,
    return
  }
  func.func @transform_0(%arg0: i32) -> (i32, i32) {
    %c0_i32 = arith.constant 0 : i32
    %c0_i32_0 = arith.constant 0 : i32
    return %arg0, %c0_i32 : i32, i32
  }
  func.func @transform_1(%arg0: i32) -> (i32, i32) {
    %c0_i32 = arith.constant 0 : i32
    %c0_i32_0 = arith.constant 0 : i32
    %c0_i32_1 = arith.constant 0 : i32
    return %c0_i32, %c0_i32_0 : i32, i32
  }
  func.func @transform_2(%arg0: i32) -> (i32, i32) {
    %c0_i32 = arith.constant 0 : i32
    %c0_i32_0 = arith.constant 0 : i32
    %c0_i32_1 = arith.constant 0 : i32
    return %c0_i32, %c0_i32_0 : i32, i32
  }
  func.func @transform_3(%arg0: i32) -> (i32, i32) {
    %c0_i32 = arith.constant 0 : i32
    %c0_i32_0 = arith.constant 0 : i32
    %c0_i32_1 = arith.constant 0 : i32
    return %c0_i32, %c0_i32_0 : i32, i32
  }
  func.func @transform_4(%arg0: i32) -> (i32, i32) {
    %c0_i32 = arith.constant 0 : i32
    %c0_i32_0 = arith.constant 0 : i32
    %c0_i32_1 = arith.constant 0 : i32
    return %c0_i32, %c0_i32_0 : i32, i32
  }
  func.func @transform_5(%arg0: i32) -> (i32, i32) {
    %c0_i32 = arith.constant 0 : i32
    %c0_i32_0 = arith.constant 0 : i32
    %c0_i32_1 = arith.constant 0 : i32
    return %c0_i32, %c0_i32_0 : i32, i32
  }
  func.func @transform_6(%arg0: i32) -> (i32, i32) {
    %c0_i32 = arith.constant 0 : i32
    %c0_i32_0 = arith.constant 0 : i32
    %c0_i32_1 = arith.constant 0 : i32
    return %c0_i32, %c0_i32_0 : i32, i32
  }
  func.func @transform_7(%arg0: i32) -> (i32, i32) {
    %c0_i32 = arith.constant 0 : i32
    %c0_i32_0 = arith.constant 0 : i32
    return %arg0, %c0_i32 : i32, i32
  }
}

</mosaic_0001>

<bundles_post_ra>
// kernel: tpu_custom_call.1
= control target key start
LH: loop header
LB: loop body
LE: loop exit
PB: predicated region body
PF: predicated region fallthrough
CT: control target
= control target key end

     0   :  { %s1048_s0 = inlined_call_operand.vmem [shape: bf16[8,128], index: 0, kind: input, shape index: {}]   ;;  %s1049_s1 = inlined_call_operand.vmem [shape: bf16[128,192], index: 1, kind: input, shape index: {}]   ;;  %s1050_s2 = inlined_call_operand.vmem [shape: f32[3,192], index: 2, kind: input, shape index: {}]   ;;  %s1051_s3 = inlined_call_operand.vmem [shape: f32[192,8], index: 3, kind: input, shape index: {}]   ;;  %s1052_s4 = inlined_call_operand.vmem [shape: f32[8,192], index: 4, kind: input, shape index: {}]   ;;  %s1053_s5 = inlined_call_operand.vmem [shape: bf16[192,128], index: 5, kind: input, shape index: {}]   ;;  %s1054_s6 = inlined_call_operand.vmem [shape: f32[1,128], index: 6, kind: input, shape index: {}]   ;;  %s1055_s7 = inlined_call_operand.hbm [shape: f32[8,128], index: 7, kind: output, shape index: {}]  }
   0x1   :  { %v615_v0 = vld [vmem:[%s1049_s1 + $0x70] sm:$0xf]  ;;  %v691_v1 = vld [vmem:[%s1049_s1 + $0x74] sm:$0xf0]  ;;  %v690_v2 = vld [vmem:[%s1049_s1 + $0x74] sm:$0xf] }
   0x2   :  { %v616_v3 = vor.u32 %v691_v1, %v615_v0  ;;  %v617_v4 = vld [vmem:[%s1049_s1 + $0x78] sm:$0xf0]  ;;  %v607_v5 = vld [vmem:[%s1049_s1 + $0x60] sm:$0xf]  ;;  %v689_v6 = vld [vmem:[%s1049_s1 + $0x64] sm:$0xf0] }
   0x3   :  { %v620_v7 = vor.u32 %v690_v2, %v617_v4  ;;  %v688_v8 = vld [vmem:[%s1049_s1 + $0x64] sm:$0xf]  ;;  %v609_v9 = vld [vmem:[%s1049_s1 + $0x68] sm:$0xf0]  ;;  %v608_v10 = vor.u32 %v689_v6, %v607_v5  ;;  %v599_v12 = vld [vmem:[%s1049_s1 + $0x50] sm:$0xf] }
   0x4   :  { %133 = vmatpush.bf16.msra.mxu0 %v616_v3  ;;  %v612_v11 = vor.u32 %v688_v8, %v609_v9  ;;  %v687_v13 = vld [vmem:[%s1049_s1 + $0x54] sm:$0xf0]  ;;  %v686_v14 = vld [vmem:[%s1049_s1 + $0x54] sm:$0xf]  ;;  %v601_v15 = vld [vmem:[%s1049_s1 + $0x58] sm:$0xf0] }
   0x5   :  { %146 = vmatpush.bf16.msra.mxu1 %v620_v7  ;;  %v600_v16 = vor.u32 %v687_v13, %v599_v12  ;;  %v604_v17 = vor.u32 %v686_v14, %v601_v15  ;;  %v591_v18 = vld [vmem:[%s1049_s1 + $0x40] sm:$0xf]  ;;  %v685_v19 = vld [vmem:[%s1049_s1 + $0x44] sm:$0xf0]  ;;  %v684_v20 = vld [vmem:[%s1049_s1 + $0x44] sm:$0xf] }
   0x6   :  { %v593_v21 = vld [vmem:[%s1049_s1 + $0x48] sm:$0xf0]  ;;  %v592_v22 = vor.u32 %v685_v19, %v591_v18  ;;  %v828_v23 = vld [vmem:[%s1051_s3 + $0x78] sm:$0xff]  ;;  %v833_v24 = vld [vmem:[%s1051_s3 + $0x70] sm:$0xff] }
   0x7   :  { %v596_v25 = vor.u32 %v684_v20, %v593_v21  ;;  %v583_v26 = vld [vmem:[%s1049_s1 + $0x30] sm:$0xf]  ;;  %v683_v27 = vld [vmem:[%s1049_s1 + $0x34] sm:$0xf0]  ;;  %189 = vmatpush.msra.mxu2 %v828_v23  ;;  %v682_v28 = vld [vmem:[%s1049_s1 + $0x34] sm:$0xf] }
   0x8   :  { %134 = vmatpush.bf16.msra.mxu0 %v608_v10  ;;  %v585_v29 = vld [vmem:[%s1049_s1 + $0x38] sm:$0xf0]  ;;  %v851_v30 = vld [vmem:[%s1051_s3 + $0x68] sm:$0xff]  ;;  %v862_v32 = vld [vmem:[%s1051_s3 + $0xb0] sm:$0xff]  ;;  %v584_v33 = vor.u32 %v683_v27, %v583_v26 }
   0x9   :  { %147 = vmatpush.bf16.msra.mxu1 %v612_v11  ;;  %190 = vmatpush.msra.mxu2 %v833_v24  ;;  %v857_v31 = vld [vmem:[%s1051_s3 + $0xb8] sm:$0xff]  ;;  %v867_v34 = vld [vmem:[%s1051_s3 + $0x60] sm:$0xff]  ;;  %v588_v35 = vor.u32 %v682_v28, %v585_v29  ;;  %v681_v37 = vld [vmem:[%s1049_s1 + $0x24] sm:$0xf0] }
   0xa   :  { %217 = vmatpush.msra.mxu3 %v857_v31  ;;  %v575_v36 = vld [vmem:[%s1049_s1 + $0x20] sm:$0xf]  ;;  %v180_v38 = vld [vmem:[%s1051_s3 + $0xa8] sm:$0xff]  ;;  %v680_v39 = vld [vmem:[%s1049_s1 + $0x24] sm:$0xf] }
   0xb   :  { %191 = vmatpush.msra.mxu2 %v851_v30  ;;  %v577_v40 = vld [vmem:[%s1049_s1 + $0x28] sm:$0xf0]  ;;  %v170_v41 = vld [vmem:[%s1051_s3 + $0x58] sm:$0xff]  ;;  %v179_v42 = vld [vmem:[%s1051_s3 + $0xa0] sm:$0xff] }
   0xc   :  { %135 = vmatpush.bf16.msra.mxu0 %v600_v16  ;;  %218 = vmatpush.msra.mxu3 %v862_v32 }
   0xd   :  { %148 = vmatpush.bf16.msra.mxu1 %v604_v17  ;;  %192 = vmatpush.msra.mxu2 %v867_v34 }
  0x10   :  { %136 = vmatpush.bf16.msra.mxu0 %v592_v22 }
  0x11   :  { %149 = vmatpush.bf16.msra.mxu1 %v596_v25 }
  0x12   :  { %12 = vsyncpa [#allocation3], 0  ;;  %v576_v43 = vor.u32 %v681_v37, %v575_v36  ;;  %v169_v44 = vld [vmem:[%s1051_s3 + $0x50] sm:$0xff]  ;;  %219 = vmatpush.msra.mxu3 %v180_v38  ;;  %v580_v45 = vor.u32 %v680_v39, %v577_v40  ;;  %v679_v47 = vld [vmem:[%s1049_s1 + $0x14] sm:$0xf0]  ;;  %193 = vmatpush.msra.mxu2 %v170_v41  ;;  %vm185_vm0 = vcmask 523264  }
  0x13   :  { %v567_v46 = vld [vmem:[%s1049_s1 + $0x10] sm:$0xf]  ;;  %v178_v48 = vld [vmem:[%s1051_s3 + $0x98] sm:$0xff]  ;;  %v678_v49 = vld [vmem:[%s1049_s1 + $0x14] sm:$0xf]  ;;  %vm229_vm1 = vcmask 64512  }
  0x14   :  { %137 = vmatpush.bf16.msra.mxu0 %v584_v33  ;;  %v569_v50 = vld [vmem:[%s1049_s1 + $0x18] sm:$0xf0]  ;;  %v168_v51 = vld [vmem:[%s1051_s3 + $0x48] sm:$0xff]  ;;  %220 = vmatpush.msra.mxu3 %v179_v42  ;;  %v177_v52 = vld [vmem:[%s1051_s3 + $0x90] sm:$0xff]  ;;  %v568_v53 = vor.u32 %v679_v47, %v567_v46  ;;  %s736_s24 = smov [#allocation2]  }
  0x15   :  { %150 = vmatpush.bf16.msra.mxu1 %v588_v35  ;;  %194 = vmatpush.msra.mxu2 %v169_v44  ;;  %v167_v54 = vld [vmem:[%s1051_s3 + $0x40] sm:$0xff]  ;;  %v572_v55 = vor.u32 %v678_v49, %v569_v50  ;;  %v677_v57 = vld [vmem:[%s1049_s1 + $0x4] sm:$0xf0]  ;;  %v561_v59 = vld [vmem:[%s1049_s1 + $0x8] sm:$0xf0] }
  0x16   :  { %221 = vmatpush.msra.mxu3 %v178_v48  ;;  %v559_v56 = vld [vmem:[%s1049_s1] sm:$0xf]  ;;  %v676_v58 = vld [vmem:[%s1049_s1 + $0x4] sm:$0xf]  ;;  %v166_v60 = vld [vmem:[%s1051_s3 + $0x38] sm:$0xff] }
  0x17   :  { %195 = vmatpush.msra.mxu2 %v168_v51  ;;  %v560_v61 = vor.u32 %v677_v57, %v559_v56  ;;  %v165_v62 = vld [vmem:[%s1051_s3 + $0x30] sm:$0xff]  ;;  %v564_v63 = vor.u32 %v676_v58, %v561_v59  ;;  %v164_v0 = vld [vmem:[%s1051_s3 + $0x28] sm:$0xff]  ;;  %v28_v1 = vld [vmem:[%s1048_s0] sm:$0xf] }
  0x18   :  { %138 = vmatpush.bf16.msra.mxu0 %v576_v43  ;;  %222 = vmatpush.msra.mxu3 %v177_v52  ;;  %v163_v2 = vld [vmem:[%s1051_s3 + $0x20] sm:$0xff]  ;;  %v162_v3 = vld [vmem:[%s1051_s3 + $0x18] sm:$0xff]  ;;  %v161_v4 = vld [vmem:[%s1051_s3 + $0x10] sm:$0xff] }
  0x19   :  { %151 = vmatpush.bf16.msra.mxu1 %v580_v45  ;;  %196 = vmatpush.msra.mxu2 %v167_v54  ;;  %v160_v5 = vld [vmem:[%s1051_s3 + $0x8] sm:$0xff]  ;;  %v159_v7 = vld [vmem:[%s1051_s3] sm:$0xff]  ;;  %v699_v36 = vld [vmem:[%s1053_s5 + $0x38] sm:$0xff] }
  0x1a   :  { %v176_v6 = vld [vmem:[%s1051_s3 + $0x88] sm:$0xff]  ;;  %v175_v8 = vld [vmem:[%s1051_s3 + $0x80] sm:$0xff]  ;;  %v698_v37 = vld [vmem:[%s1053_s5 + $0x30] sm:$0xff]  ;;  %s546_s3 = sshll.u32 %s736_s24, 4  ;;  %s547_s3 = int_to_ptr.vmem [resolvable:$true] %s546_s3 }
  0x1b   :  { %197 = vmatpush.msra.mxu2 %v166_v60  ;;  %223 = vmatpush.msra.mxu3 %v176_v6  ;;  %v183_v9 = vld [vmem:[%s1052_s4] sm:$0xff]  ;;  %v184_v21 = vld [vmem:[%s1052_s4 + $0x8] sm:$0xff]  ;;  %v695_v40 = vld [vmem:[%s1053_s5 + $0x18] sm:$0xff]  ;;  %s548_s4 = sshll.u32 %s1055_s7, 4  ;;  %s549_s4 = int_to_ptr.hbm [resolvable:$true] %s548_s4 }
  0x1c   :  { %139 = vmatpush.bf16.msra.mxu0 %v568_v53  ;;  %v978_v10 = vld [vmem:[%s1050_s2] sm:$0x77]  ;;  %v693_v43 = vld [vmem:[%s1053_s5 + $0x8] sm:$0xff] }
  0x1d   :  { %152 = vmatpush.bf16.msra.mxu1 %v572_v55  ;;  %198 = vmatpush.msra.mxu2 %v165_v62  ;;  %v47_v11 = vperm.slane %v978_v10, 0  ;;  %v48_v12 = vperm.slane %v978_v10, 4  ;;  %v696_v39 = vld [vmem:[%s1053_s5 + $0x20] sm:$0xff]  ;;  %v701_v46 = vld [vmem:[%s1053_s5 + $0x48] sm:$0xff]  ;;  %v391_v59 = vperm.slane %v978_v10, 1 }
  0x1e   :  { %224 = vmatpush.msra.mxu3 %v175_v8  ;;  %v692_v45 = vld [vmem:[%s1053_s5] sm:$0xff] }
  0x1f   :  { %199 = vmatpush.msra.mxu2 %v164_v0  ;;  %v51_v13 = vperm.slane %v47_v11, 0  ;;  %v52_v14 = vperm.slane %v48_v12, 0  ;;  %v700_v49 = vld [vmem:[%s1053_s5 + $0x40] sm:$0xff] }
  0x20   :  { %140 = vmatpush.bf16.msra.mxu0 %v560_v61  ;;  %248 = vmatpush.msrb.mxu3 %v183_v9 }
  0x21   :  { %153 = vmatpush.bf16.msra.mxu1 %v564_v63  ;;  %200 = vmatpush.msra.mxu2 %v163_v2 }
  0x23   :  { %141 = vmatmul.bf16.vlgmr.msra.gmra.mxu0 %v28_v1  ;;  %201 = vmatpush.msra.mxu2 %v162_v3 }
  0x24   :  { %282 = vmatpush.msrb.mxu0 %v828_v23  ;;  %154 = vmatmul.bf16.vlgmr.msra.gmra.mxu1 %v28_v1  ;;  %v395_v1 = vperm.slane %v391_v59, 1 }
  0x25   :  { %310 = vmatpush.msrb.mxu1 %v857_v31  ;;  %202 = vmatpush.msra.mxu2 %v161_v4 }
  0x26   :  { %283 = vmatpush.msrb.mxu0 %v833_v24 }
  0x27   :  { %311 = vmatpush.msrb.mxu1 %v862_v32  ;;  %203 = vmatpush.msra.mxu2 %v160_v5 }
  0x28   :  { %284 = vmatpush.msrb.mxu0 %v851_v30 }
  0x29   :  { %312 = vmatpush.msrb.mxu1 %v180_v38  ;;  %204 = vmatpush.msra.mxu2 %v159_v7  ;;  %v697_v38 = vld [vmem:[%s1053_s5 + $0x28] sm:$0xff] }
  0x2a   :  { %285 = vmatpush.msrb.mxu0 %v867_v34 }
  0x2b   :  { %313 = vmatpush.msrb.mxu1 %v179_v42  ;;  %514 = vmatpush.bf16.msrb.mxu2 %v699_v36  ;;  %v703_v42 = vld [vmem:[%s1053_s5 + $0x58] sm:$0xff] }
  0x2c   :  { %286 = vmatpush.msrb.mxu0 %v170_v41  ;;  %v694_v41 = vld [vmem:[%s1053_s5 + $0x10] sm:$0xff] }
  0x2d   :  { %314 = vmatpush.msrb.mxu1 %v178_v48 }
  0x2e   :  { %287 = vmatpush.msrb.mxu0 %v169_v44  ;;  %v702_v44 = vld [vmem:[%s1053_s5 + $0x50] sm:$0xff] }
  0x2f   :  { %315 = vmatpush.msrb.mxu1 %v177_v52  ;;  %515 = vmatpush.bf16.msrb.mxu2 %v698_v37 }
  0x30   :  { %288 = vmatpush.msrb.mxu0 %v168_v51 }
  0x31   :  { %316 = vmatpush.msrb.mxu1 %v176_v6 }
  0x32   :  { %289 = vmatpush.msrb.mxu0 %v167_v54 }
  0x33   :  { %317 = vmatpush.msrb.mxu1 %v175_v8  ;;  %516 = vmatpush.bf16.msrb.mxu2 %v697_v38 }
  0x34   :  { %290 = vmatpush.msrb.mxu0 %v166_v60 }
  0x35   :  { %340 = vmatpush.msra.mxu1 %v183_v9  ;;  %v400_v9 = vperm.slane %v978_v10, 6 }
  0x36   :  { %291 = vmatpush.msrb.mxu0 %v165_v62  ;;  %v399_v62 = vperm.slane %v978_v10, 2 }
  0x37   :  { %517 = vmatpush.bf16.msrb.mxu2 %v696_v39 }
  0x38   :  { %292 = vmatpush.msrb.mxu0 %v164_v0  ;;  %v403_v6 = vperm.slane %v399_v62, 2 }
  0x3a   :  { %293 = vmatpush.msrb.mxu0 %v163_v2 }
  0x3b   :  { %518 = vmatpush.bf16.msrb.mxu2 %v695_v40 }
  0x3c   :  { %294 = vmatpush.msrb.mxu0 %v162_v3 }
  0x3e   :  { %295 = vmatpush.msrb.mxu0 %v161_v4  ;;  %v392_v4 = vperm.slane %v978_v10, 5  ;;  %v705_v10 = vld [vmem:[%s1054_s6] ss:$0 sm:$0xff] }
  0x3f   :  { %519 = vmatpush.bf16.msrb.mxu2 %v694_v41 }
  0x40   :  { %296 = vmatpush.msrb.mxu0 %v160_v5  ;;  %v396_v12 = vperm.slane %v392_v4, 1 }
  0x42   :  { %297 = vmatpush.msrb.mxu0 %v159_v7 }
  0x43   :  { %520 = vmatpush.bf16.msrb.mxu2 %v693_v43 }
  0x47   :  { %521 = vmatpush.bf16.msrb.mxu2 %v692_v45 }
  0xa0   :  { %v142_v15 = vpop.f32.mrf.mxu0 }
  0xa1   :  { %v143_v16 = vadd.f32 %v142_v15, %v51_v13  ;;  %v155_v17 = vpop.f32.mrf.mxu1 }
  0xa2   :  { %v156_v18 = vadd.f32 %v155_v17, %v52_v14  ;;  %v404_v17 = vperm.slane %v400_v9, 2 }
  0xa3   :  { %205 = vmatmul.f32.vlgmr.msra.gmra.mxu2 %v143_v16 }
  0xa4   :  { %621 = vmatmul.msk.f32.vlgmr.msra.gmra.mxu3 %vm185_vm0, %v156_v18 }
  0xa5   :  { %268 = vmatpush.msra.mxu3 %v184_v21 }
  0xa8   :  { %v144_v19 = vpop.f32.mrf.mxu0 }
  0xa9   :  { %v157_v20 = vpop.f32.mrf.mxu1 }
 0x126   :  { %v206_v22 = vpop.f32.mrf.mxu2 }
 0x127   :  { %v226_v23 = vpop.f32.mrf.mxu3 }
 0x128   :  { %v227_v24 = vadd.f32 %v226_v23, %v206_v22 }
 0x12a   :  { %622 = vmatmul.msk.f32.vlgmr.msrb.gmra.mxu3 %vm229_vm1, %v227_v24 }
 0x12b   :  { %360 = vmatpush.msrb.mxu3 %v184_v21 }
 0x132   :  { %623 = vmatmul.msk.f32.vlgmr.msra.gmra.mxu3 %vm229_vm1, %v227_v24 }
 0x133   :  { %531 = vmatpush.bf16.msra.mxu3 %v703_v42 }
 0x137   :  { %532 = vmatpush.bf16.msra.mxu3 %v702_v44 }
 0x13b   :  { %533 = vmatpush.bf16.msra.mxu3 %v701_v46 }
 0x13f   :  { %534 = vmatpush.bf16.msra.mxu3 %v700_v49 }
 0x1ad   :  { %v250_v25 = vpop.f32.mrf.mxu3 }
 0x1ae   :  { %v273_v26 = vmul.f32 0.015625, %v250_v25 }
 0x1b0   :  { %v988_v27 = vsub.f32 %v143_v16, %v273_v26 }
 0x1b2   :  { %v277_v28 = vmul.f32 %v988_v27, %v988_v27 }
 0x1b4   :  { %298 = vmatmul.f32.vlgmr.msrb.gmra.mxu0 %v277_v28 }
 0x1b5   :  { %v270_v29 = vpop.f32.mrf.mxu3 }
 0x1b6   :  { %v274_v30 = vmul.f32 0.015625, %v270_v29 }
 0x1b8   :  { %v992_v31 = vsub.f32 %v156_v18, %v274_v30 }
 0x1ba   :  { %v278_v32 = vmul.f32 %v992_v31, %v992_v31 }
 0x1bc   :  { %624 = vmatmul.msk.f32.vlgmr.msrb.gmra.mxu1 %vm185_vm0, %v278_v32 }
 0x231   :  { %v299_v33 = vpop.f32.mrf.mxu0 }
 0x239   :  { %v319_v34 = vpop.f32.mrf.mxu1 }
 0x23a   :  { %v320_v35 = vadd.f32 %v319_v34, %v299_v33 }
 0x23c   :  { %625 = vmatmul.msk.f32.vlgmr.msra.gmra.mxu1 %vm229_vm1, %v320_v35  ;;  %626 = vmatmul.msk.f32.vlgmr.msrb.gmra.mxu3 %vm229_vm1, %v320_v35 }
 0x2b9   :  { %v342_v47 = vpop.f32.mrf.mxu1 }
 0x2ba   :  { %v365_v48 = vmul.f32 0.015625, %v342_v47 }
 0x2bc   :  { %v367_v50 = vadd.f32 1e-05, %v365_v48 }
 0x2be   :  { %706 = vrsqrt.f32 %v367_v50  ;;  %vm375_vm3 = vweird.f32 %v367_v50 }
 0x2bf   :  { %v362_v51 = vpop.f32.mrf.mxu3 }
 0x2c0   :  { %v366_v52 = vmul.f32 0.015625, %v362_v51 }
 0x2c2   :  { %v368_v53 = vadd.f32 1e-05, %v366_v52 }
 0x2c4   :  { %v707_v54 = vpop.eup %706  ;;  %708 = vrsqrt.f32 %v368_v53  ;;  %vm385_vm6 = vweird.f32 %v368_v53 }
 0x2c5   :  { %v370_v55 = vmul.f32 %v707_v54, %v367_v50  ;;  %vm376_vm2 = vweird.f32 %v707_v54 }
 0x2c6   :  { %vm377_vm4 = vmor %vm375_vm3, %vm376_vm2 }
 0x2c7   :  { %v371_v56 = vmul.f32 %v707_v54, %v370_v55 }
 0x2c9   :  { %v372_v57 = vmul.f32 0.5, %v371_v56 }
 0x2ca   :  { %v709_v58 = vpop.eup %708 }
 0x2cb   :  { %v373_v60 = vsub.f32 1.5, %v372_v57  ;;  %v380_v61 = vmul.f32 %v709_v58, %v368_v53  ;;  %vm386_vm5 = vweird.f32 %v709_v58 }
 0x2cc   :  { %vm387_vm7 = vmor %vm385_vm6, %vm386_vm5 }
 0x2cd   :  { %v374_v63 = vmul.f32 %v707_v54, %v373_v60  ;;  %v381_v0 = vmul.f32 %v709_v58, %v380_v61 }
 0x2cf   :  { %v378_v2 = vsel %vm377_vm4, %v707_v54, %v374_v63  ;;  %v382_v3 = vmul.f32 0.5, %v381_v0 }
 0x2d0   :  { %v389_v5 = vmul.f32 %v378_v2, %v988_v27 }
 0x2d1   :  { %v383_v7 = vsub.f32 1.5, %v382_v3 }
 0x2d2   :  { %v397_v8 = vmul.f32 %v395_v1, %v389_v5 }
 0x2d3   :  { %v384_v11 = vmul.f32 %v709_v58, %v383_v7 }
 0x2d4   :  { %v405_v13 = vadd.f32 %v403_v6, %v397_v8 }
 0x2d5   :  { %v388_v14 = vsel %vm387_vm7, %v709_v58, %v384_v11 }
 0x2d6   :  { %v390_v15 = vmul.f32 %v388_v14, %v992_v31  ;;  %v407_v16 = vmax.f32 %v405_v13, 0.0 }
 0x2d8   :  { %v398_v18 = vmul.f32 %v396_v12, %v390_v15  ;;  %v409_v19 = vpack.c.bf16 %v407_v16, %v407_v16 }
 0x2da   :  { %522 = vmatmul.bf16.vlgmr.msrb.gmra.mxu2 %v409_v19  ;;  %v406_v20 = vadd.f32 %v404_v17, %v398_v18 }
 0x2dc   :  { %v408_v21 = vmax.f32 %v406_v20, 0.0 }
 0x2de   :  { %v410_v22 = vpack.c.bf16 %v408_v21, %v408_v21 }
 0x2e0   :  { %675 = vmatmul.msk.bf16.vlgmr.msra.gmra.mxu3 %vm185_vm0, %v410_v22 }
 0x35d   :  { %v523_v23 = vpop.f32.mrf.mxu2 }
 0x35e   :  { %v524_v24 = vadd.f32 %v705_v10, %v523_v23 }
 0x363   :  { %v536_v25 = vpop.f32.mrf.mxu3 }
 0x364   :  { %v537_v26 = vadd.f32 %v536_v25, %v524_v24 }
 0x365   :  { %v525_v27 = vpop.f32.mrf.mxu2 }
 0x366   :  { %540 = vst [vmem:[#allocation2] sm:$0xff] %v537_v26 }
 0x367   :  { %551 = dma.vmem_to_hbm [thread:$0]  %s547_s3, 128, %s549_s4, [#allocation3]  }
 0x36b   :  { %v538_v28 = vpop.f32.mrf.mxu3 }
 0x36c   :  { %734 = dma.done.wait [#allocation3], 128  }
 0x36d   :  { %735 = vsyncadd [#allocation3], 4294967168 }
 0x36e   :  { %556 = vsyncpa [#allocation3], 1 }

</bundles_post_ra>
